<compile_context>
chip_gen: v7x
topology: tpu7x:2x2x1
jax: 0.10.0
libtpu: 0.0.40
codegen_flags: <defaults>
</compile_context>

<pallas_src>
import functools

import jax
import jax.numpy as jnp
from jax.experimental import pallas as pl
from jax.experimental.pallas import tpu as pltpu

_TM = 512                        # target row tile (multiple of 16 for bf16 packing)
_VMEM_CAP = 48 * 1024 * 1024     # keep under v7x's 64 MiB/TC with headroom
_VMEM_FLOOR = 16 * 1024 * 1024


def _round_up(x, m):
    return (x + m - 1) // m * m


def _lane_pad(c):
    # 256-align wide channel counts for the 2x256x256 MXU (v6e/v7x); 128 otherwise.
    return _round_up(c, 256) if c >= 256 else _round_up(c, 128)


def _pad2d(x, rows, cols):
    r, c = x.shape
    return jnp.pad(x, ((0, rows - r), (0, cols - c)))


def _pick_tm(m, target=_TM):
    """Row tile: as large as possible, but keep >=2 parallel grid steps (v7x)."""
    tm = min(target, _round_up(m, 16))
    if _round_up(m, tm) // tm < 2 and m > 16:
        tm = _round_up((m + 1) // 2, 16)
    return tm


# ----------------------------- Pallas kernels -----------------------------

def _conv_bn_relu_kernel(x_ref, w_ref, scale_ref, bias_ref, out_ref):
    """out = relu(bn(x @ w)); single full-K dot, bf16 output."""
    y = jnp.dot(x_ref[...], w_ref[...], preferred_element_type=jnp.float32)
    y = y * scale_ref[...] + bias_ref[...]
    out_ref[...] = jnp.maximum(y, 0.0).astype(out_ref.dtype)


def _conv_bn_ident_add_relu_kernel(x_ref, w_ref, scale_ref, bias_ref, res_ref,
                                   out_ref):
    """out = relu(bn(x @ w) + res)  (identity shortcut, f32 residual)."""
    y = jnp.dot(x_ref[...], w_ref[...], preferred_element_type=jnp.float32)
    y = y * scale_ref[...] + bias_ref[...] + res_ref[...]
    out_ref[...] = jnp.maximum(y, 0.0).astype(out_ref.dtype)


def _conv_bn_proj_add_relu_kernel(x_ref, w_ref, scale_ref, bias_ref,
                                  xs_ref, wsc_ref, ssc_ref, bsc_ref, out_ref):
    """out = relu(bn(x @ w) + bn_sc(xs @ wsc))  (fused 1x1 projection shortcut)."""
    y = jnp.dot(x_ref[...], w_ref[...], preferred_element_type=jnp.float32)
    y = y * scale_ref[...] + bias_ref[...]
    sc = jnp.dot(xs_ref[...], wsc_ref[...], preferred_element_type=jnp.float32)
    sc = sc * ssc_ref[...] + bsc_ref[...]
    out_ref[...] = jnp.maximum(y + sc, 0.0).astype(out_ref.dtype)


def _launch_ws(kernel, operands, out_cols, out_dtype, tm, *, flops):
    """Weight-stationary launcher: grid=(Mp/tm,), rows only.

    operands: list of (array, row_blocked).  Row-blocked arrays share the
    padded row count Mp and are tiled (tm, cols) at block (i, 0); all others
    (weights, folded-BN vectors) are loaded whole and stay VMEM-resident.
    """
    mp = operands[0][0].shape[0]
    grid = (mp // tm,)

    out_itemsize = jnp.dtype(out_dtype).itemsize
    in_specs = []
    vmem = 2 * tm * out_cols * out_itemsize            # output, 2 pipeline bufs
    for a, row_blocked in operands:
        if row_blocked:
            in_specs.append(pl.BlockSpec((tm, a.shape[1]), lambda i: (i, 0)))
            vmem += 2 * tm * a.shape[1] * a.dtype.itemsize
        else:
            in_specs.append(pl.BlockSpec(a.shape, lambda i: (0, 0)))
            vmem += 2 * a.size * a.dtype.itemsize
    vmem_limit = max(_VMEM_FLOOR, min(int(vmem * 1.25) + (2 << 20), _VMEM_CAP))

    bytes_accessed = (mp * out_cols * out_itemsize
                      + sum(a.size * a.dtype.itemsize for a, _ in operands))

    return pl.pallas_call(
        kernel,
        out_shape=jax.ShapeDtypeStruct((mp, out_cols), out_dtype),
        grid_spec=pltpu.PrefetchScalarGridSpec(
            num_scalar_prefetch=0,
            grid=grid,
            in_specs=in_specs,
            out_specs=pl.BlockSpec((tm, out_cols), lambda i: (i, 0)),
        ),
        compiler_params=pltpu.CompilerParams(
            dimension_semantics=("parallel",),
            vmem_limit_bytes=vmem_limit,
        ),
        cost_estimate=pl.CostEstimate(flops=flops, transcendentals=0,
                                      bytes_accessed=bytes_accessed),
    )(*(a for a, _ in operands))


# ------------------------------- glue (JAX) -------------------------------

def im2col(x_nhwc, kh, kw, stride, pad):
    """(N,H,W,C) -> (N*Ho*Wo, kh*kw*C); last axis ordered (tap_row, tap_col, c)."""
    x = jnp.pad(x_nhwc, ((0, 0), (pad, pad), (pad, pad), (0, 0)))
    n, h, w, c = x.shape
    ho = (h - kh) // stride + 1
    wo = (w - kw) // stride + 1
    taps = []
    for i in range(kh):
        for j in range(kw):
            taps.append(x[:, i:i + stride * ho:stride, j:j + stride * wo:stride, :])
    patches = jnp.concatenate(taps, axis=-1)
    return patches.reshape(n * ho * wo, kh * kw * c), (n, ho, wo)


def conv_weight_to_matmul(w_oihw):
    """PyTorch (Cout, Cin, kh, kw) -> (kh*kw*Cin, Cout)."""
    cout, cin, kh, kw = w_oihw.shape
    return jnp.transpose(w_oihw, (2, 3, 1, 0)).reshape(kh * kw * cin, cout)


def bn_fold(gamma, beta, mean, var, eps=1e-5):
    scale = gamma / jnp.sqrt(var + eps)
    return scale, beta - mean * scale


def pack_params(raw):
    """One-time weight prep (outside the jitted forward): fold BN, reshape,
    zero-pad to lane-dense shapes, cast weights to bf16."""
    cout, cin = raw["w1"].shape[:2]
    coutp = _lane_pad(cout)

    def pack_w(w_mat):
        kp = _round_up(w_mat.shape[0], 128)
        return _pad2d(w_mat, kp, coutp).astype(jnp.bfloat16)

    def pack_vec(v):
        return jnp.pad(v, (0, coutp - cout)).reshape(1, coutp).astype(jnp.float32)

    s1, b1 = bn_fold(raw["g1"], raw["be1"], raw["m1"], raw["v1"])
    s2, b2 = bn_fold(raw["g2"], raw["be2"], raw["m2"], raw["v2"])
    packed = {
        "rhs1": pack_w(conv_weight_to_matmul(raw["w1"])),
        "scale1": pack_vec(s1), "bias1": pack_vec(b1),
        "rhs2": pack_w(conv_weight_to_matmul(raw["w2"])),
        "scale2": pack_vec(s2), "bias2": pack_vec(b2),
    }
    if "w_sc" in raw:
        ssc, bsc = bn_fold(raw["g_sc"], raw["be_sc"], raw["m_sc"], raw["v_sc"])
        packed["rhs_sc"] = pack_w(conv_weight_to_matmul(raw["w_sc"]))
        packed["scale_sc"] = pack_vec(ssc)
        packed["bias_sc"] = pack_vec(bsc)
    return packed


def basic_block_forward(x_nchw, packed, *, stride, cout):
    """Pallas BasicBlock forward: (N, Cin, H, W) -> (N, Cout, Ho, Wo)."""
    x = jnp.transpose(x_nchw, (0, 2, 3, 1)).astype(jnp.float32)     # NHWC
    n, h, w, cin = x.shape
    x_bf = x.astype(jnp.bfloat16)
    has_sc = "rhs_sc" in packed
    if not has_sc:
        assert stride == 1 and cin == cout, (
            "identity shortcut requires stride==1 and in_channels==out_channels")

    k1p, coutp = packed["rhs1"].shape

    # ---- conv1 (3x3/stride/pad1) + BN + ReLU -> bf16 ----
    p1, (_, ho, wo) = im2col(x_bf, 3, 3, stride, 1)
    m = n * ho * wo
    tm = _pick_tm(m)
    mp = _round_up(m, tm)
    lhs1 = _pad2d(p1, mp, k1p)

    ops1 = [(lhs1, True), (packed["rhs1"], False),
            (packed["scale1"], False), (packed["bias1"], False)]
    y1_full = _launch_ws(_conv_bn_relu_kernel, ops1, coutp, jnp.bfloat16, tm,
                         flops=2 * mp * k1p * coutp)
    y1 = y1_full[:m, :cout]

    # ---- conv2 (3x3/1/pad1) + BN + shortcut + ReLU -> f32 ----
    p2, _ = im2col(y1.reshape(n, ho, wo, cout), 3, 3, 1, 1)
    k2p = packed["rhs2"].shape[0]
    lhs2 = _pad2d(p2, mp, k2p)

    if has_sc:
        # Fused 1x1/stride projection shortcut: second small dot with K=cin
        # over the strided input (no im2col, no residual HBM round trip).
        cinp = packed["rhs_sc"].shape[0]
        xs = _pad2d(x_bf[:, ::stride, ::stride, :].reshape(m, cin), mp, cinp)
        ops2 = [(lhs2, True), (packed["rhs2"], False),
                (packed["scale2"], False), (packed["bias2"], False),
                (xs, True), (packed["rhs_sc"], False),
                (packed["scale_sc"], False), (packed["bias_sc"], False)]
        kernel2 = _conv_bn_proj_add_relu_kernel
        flops2 = 2 * mp * coutp * (k2p + cinp)
    else:
        # Identity shortcut: stream the raw f32 input as the residual.
        res = _pad2d(x.reshape(m, cin), mp, coutp)
        ops2 = [(lhs2, True), (packed["rhs2"], False),
                (packed["scale2"], False), (packed["bias2"], False),
                (res, True)]
        kernel2 = _conv_bn_ident_add_relu_kernel
        flops2 = 2 * mp * coutp * k2p

    y2 = _launch_ws(kernel2, ops2, coutp, jnp.float32, tm, flops=flops2)

    out_nhwc = y2[:m, :cout].reshape(n, ho, wo, cout)
    return jnp.transpose(out_nhwc, (0, 3, 1, 2))      # back to NCHW


# ----------------------------- pure-JAX reference -----------------------------

def ref_forward(x_nchw, raw, stride, eps=1e-5):
    """Reference with the same bf16-input / f32-accumulate convolutions."""
    def conv(x, w, s, pad):
        return jax.lax.conv_general_dilated(
            x.astype(jnp.bfloat16), w.astype(jnp.bfloat16), (s, s),
            [(pad, pad), (pad, pad)],
            dimension_numbers=("NCHW", "OIHW", "NCHW"),
            preferred_element_type=jnp.float32)

    def bn(x, g, b, m, v):
        return ((x - m[None, :, None, None]) / jnp.sqrt(v[None, :, None, None] + eps)
                * g[None, :, None, None] + b[None, :, None, None])

    y = conv(x_nchw, raw["w1"], stride, 1)
    y = jax.nn.relu(bn(y, raw["g1"], raw["be1"], raw["m1"], raw["v1"]))
    y = conv(y, raw["w2"], 1, 1)
    y = bn(y, raw["g2"], raw["be2"], raw["m2"], raw["v2"])
    if "w_sc" in raw:
        sc = conv(x_nchw, raw["w_sc"], stride, 0)
        sc = bn(sc, raw["g_sc"], raw["be_sc"], raw["m_sc"], raw["v_sc"])
    else:
        sc = x_nchw
    return jax.nn.relu(y + sc)


# ---------------------------------- main ----------------------------------

def init_params(key, cin, cout, stride):
    ks = jax.random.split(key, 16)
    raw = {
        "w1": 0.1 * jax.random.normal(ks[0], (cout, cin, 3, 3), jnp.float32),
        "g1": 1.0 + 0.1 * jax.random.normal(ks[1], (cout,), jnp.float32),
        "be1": 0.1 * jax.random.normal(ks[2], (cout,), jnp.float32),
        "m1": 0.1 * jax.random.normal(ks[3], (cout,), jnp.float32),
        "v1": 1.0 + 0.1 * jax.random.uniform(ks[4], (cout,), jnp.float32),
        "w2": 0.1 * jax.random.normal(ks[5], (cout, cout, 3, 3), jnp.float32),
        "g2": 1.0 + 0.1 * jax.random.normal(ks[6], (cout,), jnp.float32),
        "be2": 0.1 * jax.random.normal(ks[7], (cout,), jnp.float32),
        "m2": 0.1 * jax.random.normal(ks[8], (cout,), jnp.float32),
        "v2": 1.0 + 0.1 * jax.random.uniform(ks[9], (cout,), jnp.float32),
    }
    if stride != 1 or cin != cout:
        raw.update({
            "w_sc": 0.1 * jax.random.normal(ks[10], (cout, cin, 1, 1), jnp.float32),
            "g_sc": 1.0 + 0.1 * jax.random.normal(ks[11], (cout,), jnp.float32),
            "be_sc": 0.1 * jax.random.normal(ks[12], (cout,), jnp.float32),
            "m_sc": 0.1 * jax.random.normal(ks[13], (cout,), jnp.float32),
            "v_sc": 1.0 + 0.1 * jax.random.uniform(ks[14], (cout,), jnp.float32),
        })
    return raw


if __name__ == "__main__":
    k0, k1, k2, k3 = jax.random.split(jax.random.PRNGKey(0), 4)

    # 1) downsampling block (stride=2, cin!=cout) -> fused projection shortcut
    N, CIN, H, W, COUT, STRIDE = 2, 4, 16, 16, 8, 2
    x = jax.random.normal(k0, (N, CIN, H, W), jnp.float32)
    raw = init_params(k1, CIN, COUT, STRIDE)
    packed = pack_params(raw)                         # one-time weight prep
    fwd = jax.jit(functools.partial(basic_block_forward, stride=STRIDE, cout=COUT))
    out = jax.block_until_ready(fwd(x, packed))
    ref = ref_forward(x, raw, STRIDE)
    assert out.shape == (N, COUT, H // STRIDE, W // STRIDE), out.shape
    assert jnp.allclose(out, ref, atol=2e-3, rtol=2e-3), \
        float(jnp.max(jnp.abs(out - ref)))

    # 2) identity-shortcut block (stride=1, cin==cout)
    x2 = jax.random.normal(k2, (N, COUT, H, W), jnp.float32)
    raw2 = init_params(k3, COUT, COUT, 1)
    packed2 = pack_params(raw2)
    fwd2 = jax.jit(functools.partial(basic_block_forward, stride=1, cout=COUT))
    out2 = jax.block_until_ready(fwd2(x2, packed2))
    ref2 = ref_forward(x2, raw2, 1)
    assert out2.shape == (N, COUT, H, W), out2.shape
    assert jnp.allclose(out2, ref2, atol=2e-3, rtol=2e-3), \
        float(jnp.max(jnp.abs(out2 - ref2)))

    print("KERNEL_OK")
</pallas_src>

<mosaic_0001>
module attributes {stable_mosaic.version = 11 : i64} {
  func.func @_conv_bn_relu_kernel(%arg0: i32, %arg1: memref<64x128xbf16, #tpu.memory_space<vmem>>, %arg2: memref<128x128xbf16, #tpu.memory_space<vmem>>, %arg3: memref<1x128xf32, #tpu.memory_space<vmem>>, %arg4: memref<1x128xf32, #tpu.memory_space<vmem>>, %arg5: memref<64x128xbf16, #tpu.memory_space<vmem>>) attributes {dimension_semantics = [#tpu.dimension_semantics<parallel>], iteration_bounds = array<i64: 2>, scalar_prefetch = 0 : i64, scratch_operands = 0 : i64, tpu.core_type = #tpu.core_type<tc>, window_params = [{transform_indices = @transform_0, window_bounds = array<i64: 64, 128>}, {pipeline_mode = #tpu.pipeline_mode<synchronous>, transform_indices = @transform_1, window_bounds = array<i64: 128, 128>}, {pipeline_mode = #tpu.pipeline_mode<synchronous>, transform_indices = @transform_2, window_bounds = array<i64: 1, 128>}, {pipeline_mode = #tpu.pipeline_mode<synchronous>, transform_indices = @transform_3, window_bounds = array<i64: 1, 128>}, {transform_indices = @transform_4, window_bounds = array<i64: 64, 128>}]} {
    %c0 = arith.constant 0 : index
    %c0_0 = arith.constant 0 : index
    %0 = vector.load %arg1[%c0, %c0_0] : memref<64x128xbf16, #tpu.memory_space<vmem>>, vector<64x128xbf16>
    %c0_1 = arith.constant 0 : index
    %c0_2 = arith.constant 0 : index
    %1 = vector.load %arg2[%c0_1, %c0_2] : memref<128x128xbf16, #tpu.memory_space<vmem>>, vector<128x128xbf16>
    %cst = arith.constant dense<0.000000e+00> : vector<64x128xf32>
    %2 = tpu.matmul %0, %1, %cst {dimension_numbers = #tpu.dot_dimension_numbers<[1], [0], [0], [1], [0, 0, 1, 1], [], []>} : vector<64x128xbf16>, vector<128x128xbf16>, vector<64x128xf32> -> vector<64x128xf32>
    %c0_3 = arith.constant 0 : index
    %c0_4 = arith.constant 0 : index
    %3 = vector.load %arg3[%c0_3, %c0_4] : memref<1x128xf32, #tpu.memory_space<vmem>>, vector<1x128xf32>
    %4 = vector.broadcast %3 : vector<1x128xf32> to vector<64x128xf32>
    %5 = arith.mulf %2, %4 : vector<64x128xf32>
    %c0_5 = arith.constant 0 : index
    %c0_6 = arith.constant 0 : index
    %6 = vector.load %arg4[%c0_5, %c0_6] : memref<1x128xf32, #tpu.memory_space<vmem>>, vector<1x128xf32>
    %7 = vector.broadcast %6 : vector<1x128xf32> to vector<64x128xf32>
    %8 = arith.addf %5, %7 : vector<64x128xf32>
    %cst_7 = arith.constant 0.000000e+00 : f32
    %9 = vector.broadcast %cst_7 : f32 to vector<64x128xf32>
    %10 = arith.maximumf %8, %9 : vector<64x128xf32>
    %11 = arith.truncf %10 : vector<64x128xf32> to vector<64x128xbf16>
    %c0_8 = arith.constant 0 : index
    %c0_9 = arith.constant 0 : index
    %12 = vector.load %arg5[%c0_8, %c0_9] : memref<64x128xbf16, #tpu.memory_space<vmem>>, vector<64x128xbf16>
    tpu.vector_store %arg5[%c0_8, %c0_9], %11 {strides = array<i32>} : memref<64x128xbf16, #tpu.memory_space<vmem>>, vector<64x128xbf16>,
    return
  }
  func.func @transform_0(%arg0: i32) -> (i32, i32) {
    %c0_i32 = arith.constant 0 : i32
    %c0_i32_0 = arith.constant 0 : i32
    return %arg0, %c0_i32 : i32, i32
  }
  func.func @transform_1(%arg0: i32) -> (i32, i32) {
    %c0_i32 = arith.constant 0 : i32
    %c0_i32_0 = arith.constant 0 : i32
    %c0_i32_1 = arith.constant 0 : i32
    return %c0_i32, %c0_i32_0 : i32, i32
  }
  func.func @transform_2(%arg0: i32) -> (i32, i32) {
    %c0_i32 = arith.constant 0 : i32
    %c0_i32_0 = arith.constant 0 : i32
    %c0_i32_1 = arith.constant 0 : i32
    return %c0_i32, %c0_i32_0 : i32, i32
  }
  func.func @transform_3(%arg0: i32) -> (i32, i32) {
    %c0_i32 = arith.constant 0 : i32
    %c0_i32_0 = arith.constant 0 : i32
    %c0_i32_1 = arith.constant 0 : i32
    return %c0_i32, %c0_i32_0 : i32, i32
  }
  func.func @transform_4(%arg0: i32) -> (i32, i32) {
    %c0_i32 = arith.constant 0 : i32
    %c0_i32_0 = arith.constant 0 : i32
    return %arg0, %c0_i32 : i32, i32
  }
}

module attributes {stable_mosaic.version = 11 : i64} {
  func.func @_conv_bn_proj_add_relu_kernel(%arg0: i32, %arg1: memref<64x128xbf16, #tpu.memory_space<vmem>>, %arg2: memref<128x128xbf16, #tpu.memory_space<vmem>>, %arg3: memref<1x128xf32, #tpu.memory_space<vmem>>, %arg4: memref<1x128xf32, #tpu.memory_space<vmem>>, %arg5: memref<64x128xbf16, #tpu.memory_space<vmem>>, %arg6: memref<128x128xbf16, #tpu.memory_space<vmem>>, %arg7: memref<1x128xf32, #tpu.memory_space<vmem>>, %arg8: memref<1x128xf32, #tpu.memory_space<vmem>>, %arg9: memref<64x128xf32, #tpu.memory_space<vmem>>) attributes {dimension_semantics = [#tpu.dimension_semantics<parallel>], iteration_bounds = array<i64: 2>, scalar_prefetch = 0 : i64, scratch_operands = 0 : i64, tpu.core_type = #tpu.core_type<tc>, window_params = [{transform_indices = @transform_0, window_bounds = array<i64: 64, 128>}, {pipeline_mode = #tpu.pipeline_mode<synchronous>, transform_indices = @transform_1, window_bounds = array<i64: 128, 128>}, {pipeline_mode = #tpu.pipeline_mode<synchronous>, transform_indices = @transform_2, window_bounds = array<i64: 1, 128>}, {pipeline_mode = #tpu.pipeline_mode<synchronous>, transform_indices = @transform_3, window_bounds = array<i64: 1, 128>}, {transform_indices = @transform_4, window_bounds = array<i64: 64, 128>}, {pipeline_mode = #tpu.pipeline_mode<synchronous>, transform_indices = @transform_5, window_bounds = array<i64: 128, 128>}, {pipeline_mode = #tpu.pipeline_mode<synchronous>, transform_indices = @transform_6, window_bounds = array<i64: 1, 128>}, {pipeline_mode = #tpu.pipeline_mode<synchronous>, transform_indices = @transform_7, window_bounds = array<i64: 1, 128>}, {transform_indices = @transform_8, window_bounds = array<i64: 64, 128>}]} {
    %c0 = arith.constant 0 : index
    %c0_0 = arith.constant 0 : index
    %0 = vector.load %arg1[%c0, %c0_0] : memref<64x128xbf16, #tpu.memory_space<vmem>>, vector<64x128xbf16>
    %c0_1 = arith.constant 0 : index
    %c0_2 = arith.constant 0 : index
    %1 = vector.load %arg2[%c0_1, %c0_2] : memref<128x128xbf16, #tpu.memory_space<vmem>>, vector<128x128xbf16>
    %cst = arith.constant dense<0.000000e+00> : vector<64x128xf32>
    %2 = tpu.matmul %0, %1, %cst {dimension_numbers = #tpu.dot_dimension_numbers<[1], [0], [0], [1], [0, 0, 1, 1], [], []>} : vector<64x128xbf16>, vector<128x128xbf16>, vector<64x128xf32> -> vector<64x128xf32>
    %c0_3 = arith.constant 0 : index
    %c0_4 = arith.constant 0 : index
    %3 = vector.load %arg3[%c0_3, %c0_4] : memref<1x128xf32, #tpu.memory_space<vmem>>, vector<1x128xf32>
    %4 = vector.broadcast %3 : vector<1x128xf32> to vector<64x128xf32>
    %5 = arith.mulf %2, %4 : vector<64x128xf32>
    %c0_5 = arith.constant 0 : index
    %c0_6 = arith.constant 0 : index
    %6 = vector.load %arg4[%c0_5, %c0_6] : memref<1x128xf32, #tpu.memory_space<vmem>>, vector<1x128xf32>
    %7 = vector.broadcast %6 : vector<1x128xf32> to vector<64x128xf32>
    %8 = arith.addf %5, %7 : vector<64x128xf32>
    %c0_7 = arith.constant 0 : index
    %c0_8 = arith.constant 0 : index
    %9 = vector.load %arg5[%c0_7, %c0_8] : memref<64x128xbf16, #tpu.memory_space<vmem>>, vector<64x128xbf16>
    %c0_9 = arith.constant 0 : index
    %c0_10 = arith.constant 0 : index
    %10 = vector.load %arg6[%c0_9, %c0_10] : memref<128x128xbf16, #tpu.memory_space<vmem>>, vector<128x128xbf16>
    %cst_11 = arith.constant dense<0.000000e+00> : vector<64x128xf32>
    %11 = tpu.matmul %9, %10, %cst_11 {dimension_numbers = #tpu.dot_dimension_numbers<[1], [0], [0], [1], [0, 0, 1, 1], [], []>} : vector<64x128xbf16>, vector<128x128xbf16>, vector<64x128xf32> -> vector<64x128xf32>
    %c0_12 = arith.constant 0 : index
    %c0_13 = arith.constant 0 : index
    %12 = vector.load %arg7[%c0_12, %c0_13] : memref<1x128xf32, #tpu.memory_space<vmem>>, vector<1x128xf32>
    %13 = vector.broadcast %12 : vector<1x128xf32> to vector<64x128xf32>
    %14 = arith.mulf %11, %13 : vector<64x128xf32>
    %c0_14 = arith.constant 0 : index
    %c0_15 = arith.constant 0 : index
    %15 = vector.load %arg8[%c0_14, %c0_15] : memref<1x128xf32, #tpu.memory_space<vmem>>, vector<1x128xf32>
    %16 = vector.broadcast %15 : vector<1x128xf32> to vector<64x128xf32>
    %17 = arith.addf %14, %16 : vector<64x128xf32>
    %18 = arith.addf %8, %17 : vector<64x128xf32>
    %cst_16 = arith.constant 0.000000e+00 : f32
    %19 = vector.broadcast %cst_16 : f32 to vector<64x128xf32>
    %20 = arith.maximumf %18, %19 : vector<64x128xf32>
    %c0_17 = arith.constant 0 : index
    %c0_18 = arith.constant 0 : index
    %21 = vector.load %arg9[%c0_17, %c0_18] : memref<64x128xf32, #tpu.memory_space<vmem>>, vector<64x128xf32>
    tpu.vector_store %arg9[%c0_17, %c0_18], %20 {strides = array<i32>} : memref<64x128xf32, #tpu.memory_space<vmem>>, vector<64x128xf32>,
    return
  }
  func.func @transform_0(%arg0: i32) -> (i32, i32) {
    %c0_i32 = arith.constant 0 : i32
    %c0_i32_0 = arith.constant 0 : i32
    return %arg0, %c0_i32 : i32, i32
  }
  func.func @transform_1(%arg0: i32) -> (i32, i32) {
    %c0_i32 = arith.constant 0 : i32
    %c0_i32_0 = arith.constant 0 : i32
    %c0_i32_1 = arith.constant 0 : i32
    return %c0_i32, %c0_i32_0 : i32, i32
  }
  func.func @transform_2(%arg0: i32) -> (i32, i32) {
    %c0_i32 = arith.constant 0 : i32
    %c0_i32_0 = arith.constant 0 : i32
    %c0_i32_1 = arith.constant 0 : i32
    return %c0_i32, %c0_i32_0 : i32, i32
  }
  func.func @transform_3(%arg0: i32) -> (i32, i32) {
    %c0_i32 = arith.constant 0 : i32
    %c0_i32_0 = arith.constant 0 : i32
    %c0_i32_1 = arith.constant 0 : i32
    return %c0_i32, %c0_i32_0 : i32, i32
  }
  func.func @transform_4(%arg0: i32) -> (i32, i32) {
    %c0_i32 = arith.constant 0 : i32
    %c0_i32_0 = arith.constant 0 : i32
    return %arg0, %c0_i32 : i32, i32
  }
  func.func @transform_5(%arg0: i32) -> (i32, i32) {
    %c0_i32 = arith.constant 0 : i32
    %c0_i32_0 = arith.constant 0 : i32
    %c0_i32_1 = arith.constant 0 : i32
    return %c0_i32, %c0_i32_0 : i32, i32
  }
  func.func @transform_6(%arg0: i32) -> (i32, i32) {
    %c0_i32 = arith.constant 0 : i32
    %c0_i32_0 = arith.constant 0 : i32
    %c0_i32_1 = arith.constant 0 : i32
    return %c0_i32, %c0_i32_0 : i32, i32
  }
  func.func @transform_7(%arg0: i32) -> (i32, i32) {
    %c0_i32 = arith.constant 0 : i32
    %c0_i32_0 = arith.constant 0 : i32
    %c0_i32_1 = arith.constant 0 : i32
    return %c0_i32, %c0_i32_0 : i32, i32
  }
  func.func @transform_8(%arg0: i32) -> (i32, i32) {
    %c0_i32 = arith.constant 0 : i32
    %c0_i32_0 = arith.constant 0 : i32
    return %arg0, %c0_i32 : i32, i32
  }
}

</mosaic_0001>

<bundles_post_ra>
// kernel: basic_block_forward.2
= control target key start
LH: loop header
LB: loop body
LE: loop exit
PB: predicated region body
PF: predicated region fallthrough
CT: control target
= control target key end

     0   :  { %s666_s15 = smov 0   ;;  %s726_s0 = inlined_call_operand.vmem [shape: bf16[128,128], index: 0, kind: input, shape index: {}]   ;;  %s727_s1 = inlined_call_operand.vmem [shape: bf16[128,128], index: 1, kind: input, shape index: {}]   ;;  %s728_s2 = inlined_call_operand.vmem [shape: f32[1,128], index: 2, kind: input, shape index: {}]   ;;  %s729_s3 = inlined_call_operand.vmem [shape: f32[1,128], index: 3, kind: input, shape index: {}]   ;;  %s730_s4 = inlined_call_operand.vmem [shape: bf16[128,128], index: 4, kind: output, shape index: {}]  }
   0x1 LB: > { %s497_s16 = sadd.s32 4294967295, %s639_s15   ;;  %p501_p0 = scmp.ge.s32.totalorder %s639_s15, 1  ;;  %s639_s15 = sphi %s666_s15, %s14_s15  }
   0x2   : > { %p163_p1 = scmp.lt.s32.totalorder %s639_s15, 3 }
   0x4   : > { %p164_p2 = pnand %p501_p0, %p163_p1 }
   0x5   : > { %v621_v0 = vld [vmem:[%s727_s1] sm:$0xff] (!%p164_p2)   ;;  %s502_s19 = sshll.u32 (!%p164_p2), %s497_s16, 3  ;;  %v622_v1 = vld [vmem:[%s727_s1 + $0x8] sm:$0xff] (!%p164_p2)   ;;  %v623_v2 = vld [vmem:[%s727_s1 + $0x10] sm:$0xff] (!%p164_p2)  }
   0x6   : > { %167 = sbr.rel (%p164_p2) target bundleno = 262 (0x106), region = 36  ;;  %p190_p3 = scmp.lt.s32.totalorder (!%p164_p2), %s502_s19, 15  ;;  %573 = vmatprep.subr.bf16.mxu0 (!%p164_p2), %v621_v0  ;;  %597 = vmatprep.subr.bf16.mxu1 (!%p164_p2), %v621_v0  ;;  %v624_v3 = vld [vmem:[%s727_s1 + $0x18] sm:$0xff] (!%p164_p2)   ;;  %v625_v6 = vld [vmem:[%s727_s1 + $0x20] sm:$0xff] (!%p164_p2)   ;;  %v626_v7 = vld [vmem:[%s727_s1 + $0x28] sm:$0xff] (!%p164_p2)  }
   0x7   : > { %574 = vmatpush3.bf16.msra.mxu0 (!%p164_p2), %v621_v0  ;;  %605 = vmatpush3.bf16.msra.mxu1 (!%p164_p2), %v621_v0  ;;  %v627_v8 = vld [vmem:[%s727_s1 + $0x30] sm:$0xff] (!%p164_p2)   ;;  %v628_v9 = vld [vmem:[%s727_s1 + $0x38] sm:$0xff] (!%p164_p2)   ;;  %v518_v12 = vld [vmem:[%s728_s2] ss:$0 sm:$0xff] (!%p164_p2) }
   0x8   : > { %575 = vmatprep.subr.bf16.mxu0 (!%p164_p2), %v622_v1  ;;  %598 = vmatprep.subr.bf16.mxu1 (!%p164_p2), %v622_v1  ;;  %v519_v14 = vld [vmem:[%s729_s3] ss:$0 sm:$0xff] (!%p164_p2) }
   0xb   : > { %576 = vmatpush3.bf16.msra.mxu0 (!%p164_p2), %v622_v1  ;;  %606 = vmatpush3.bf16.msra.mxu1 (!%p164_p2), %v622_v1 }
   0xc   : > { %577 = vmatprep.subr.bf16.mxu0 (!%p164_p2), %v623_v2  ;;  %599 = vmatprep.subr.bf16.mxu1 (!%p164_p2), %v623_v2 }
   0xd   : > { %s732_s19 = smov (!%p190_p3, %s502_s19), 15 }
   0xe   : > { %s503_s24 = sshll.u32 %s732_s19, 2 }
   0xf   : > { %s691_s27 = scalar_lea.vmem %s726_s0, %s503_s24  ;;  %578 = vmatpush3.bf16.msra.mxu0 %v623_v2  ;;  %607 = vmatpush3.bf16.msra.mxu1 %v623_v2  ;;  %s199_s20 = scalar_lea.vmem %s730_s4, %s503_s24 }
  0x10   : > { %v629_v4 = vld [vmem:[%s691_s27] sm:$0xff]   ;;  %v630_v5 = vld [vmem:[%s691_s27 + $0x10] sm:$0xff]   ;;  %579 = vmatprep.subr.bf16.mxu0 %v624_v3  ;;  %600 = vmatprep.subr.bf16.mxu1 %v624_v3  ;;  %v631_v10 = vld [vmem:[%s691_s27 + $0x8] sm:$0xff]  }
  0x11   : > { %589 = vmatprep.mubr.bf16.mxu0 %v629_v4  ;;  %593 = vmatprep.mubr.bf16.mxu1 %v630_v5  ;;  %v632_v11 = vld [vmem:[%s691_s27 + $0x18] sm:$0xff]  }
  0x13   : > { %580 = vmatpush3.bf16.msra.mxu0 %v624_v3  ;;  %608 = vmatpush3.bf16.msra.mxu1 %v624_v3 }
  0x14   : > { %581 = vmatprep.subr.bf16.mxu0 %v625_v6  ;;  %601 = vmatprep.subr.bf16.mxu1 %v625_v6 }
  0x17   : > { %582 = vmatpush3.bf16.msra.mxu0 %v625_v6  ;;  %609 = vmatpush3.bf16.msra.mxu1 %v625_v6 }
  0x18   : > { %583 = vmatprep.subr.bf16.mxu0 %v626_v7  ;;  %602 = vmatprep.subr.bf16.mxu1 %v626_v7 }
  0x1b   : > { %584 = vmatpush3.bf16.msra.mxu0 %v626_v7  ;;  %610 = vmatpush3.bf16.msra.mxu1 %v626_v7 }
  0x1c   : > { %585 = vmatprep.subr.bf16.mxu0 %v627_v8  ;;  %603 = vmatprep.subr.bf16.mxu1 %v627_v8 }
  0x1f   : > { %586 = vmatpush3.bf16.msra.mxu0 %v627_v8  ;;  %611 = vmatpush3.bf16.msra.mxu1 %v627_v8 }
  0x20   : > { %587 = vmatprep.subr.bf16.mxu0 %v628_v9  ;;  %604 = vmatprep.subr.bf16.mxu1 %v628_v9 }
  0x23   : > { %588 = vmatpush3.bf16.msra.mxu0 %v628_v9  ;;  %612 = vmatpush3.bf16.msra.mxu1 %v628_v9 }
  0x26   : > { %590 = vmatmul.mubr.bf16.vlgmr.msra.gmra.mrb[0].mxu0 %v631_v10  ;;  %594 = vmatmul.mubr.bf16.vlgmr.msra.gmra.mrb[0].mxu1 %v632_v11 }
  0xf9   : > { %v591_v13 = vpop.f32.mrb[0].mxu0  ;;  %v595_v15 = vpop.f32.mrb[0].mxu1 }
  0xfa   : > { %v372_v16 = vmul.f32 %v591_v13, %v518_v12  ;;  %v376_v17 = vmul.f32 %v595_v15, %v518_v12  ;;  %v332_v18 = vpop.f32.mrb[1].mxu0  ;;  %v348_v19 = vpop.f32.mrb[1].mxu1 }
  0xfb   : > { %v370_v20 = vmul.f32 %v518_v12, %v332_v18  ;;  %v374_v21 = vmul.f32 %v518_v12, %v348_v19  ;;  %v592_v22 = vpop.f32.mrb[2].mxu0  ;;  %v596_v23 = vpop.f32.mrb[2].mxu1 }
  0xfc   : > { %v387_v24 = vadd.f32 %v519_v14, %v372_v16  ;;  %v391_v25 = vadd.f32 %v519_v14, %v376_v17  ;;  %v373_v26 = vmul.f32 %v592_v22, %v518_v12  ;;  %v377_v27 = vmul.f32 %v596_v23, %v518_v12  ;;  %v335_v28 = vpop.f32.mrb[3].mxu0  ;;  %v351_v29 = vpop.f32.mrb[3].mxu1 }
  0xfd   : > { %v385_v30 = vadd.f32 %v519_v14, %v370_v20  ;;  %v389_v31 = vadd.f32 %v519_v14, %v374_v21  ;;  %v371_v32 = vmul.f32 %v518_v12, %v335_v28  ;;  %v375_v33 = vmul.f32 %v518_v12, %v351_v29 }
  0xfe   : > { %v388_v34 = vadd.f32 %v519_v14, %v373_v26  ;;  %v392_v35 = vadd.f32 %v519_v14, %v377_v27  ;;  %v395_v38 = vmax.f32 %v387_v24, 0.0  ;;  %v399_v39 = vmax.f32 %v391_v25, 0.0 }
  0xff   : > { %v386_v36 = vadd.f32 %v519_v14, %v371_v32  ;;  %v390_v37 = vadd.f32 %v519_v14, %v375_v33  ;;  %v393_v42 = vmax.f32 %v385_v30, 0.0  ;;  %v397_v43 = vmax.f32 %v389_v31, 0.0 }
 0x100   : > { %v396_v40 = vmax.f32 %v388_v34, 0.0  ;;  %v400_v41 = vmax.f32 %v392_v35, 0.0 }
 0x101   : > { %v394_v44 = vmax.f32 %v386_v36, 0.0  ;;  %v398_v45 = vmax.f32 %v390_v37, 0.0 }
 0x102   : > { %v546_v46 = vpack.c.bf16 %v396_v40, %v395_v38  ;;  %v556_v47 = vpack.c.bf16 %v400_v41, %v399_v39 }
 0x103   : > { %v541_v48 = vpack.c.bf16 %v394_v44, %v393_v42  ;;  %v551_v49 = vpack.c.bf16 %v398_v45, %v397_v43 }
 0x104   : > { %558 = vst [vmem:[%s199_s20 + $0x8] sm:$0xff] %v546_v46   ;;  %560 = vst [vmem:[%s199_s20 + $0x18] sm:$0xff] %v556_v47  }
 0x105   : > { %542 = vst [vmem:[%s199_s20] sm:$0xff] %v541_v48   ;;  %559 = vst [vmem:[%s199_s20 + $0x10] sm:$0xff] %v551_v49  }
 0x106 PF: > { %s14_s15 = sadd.s32 1, %s639_s15  }
 0x107   : > { %p11_p4 = scmp.ge.s32.totalorder %s14_s15, 4  }
 0x109   :  { %13 = sbr.rel (!%p11_p4) target bundleno = 1 (0x1), region = 66 }

// kernel: basic_block_forward.3
= control target key start
LH: loop header
LB: loop body
LE: loop exit
PB: predicated region body
PF: predicated region fallthrough
CT: control target
= control target key end

     0   :  { %s1004_s27 = smov 0   ;;  %s1110_s0 = inlined_call_operand.vmem [shape: bf16[128,128], index: 0, kind: input, shape index: {}]   ;;  %s1111_s1 = inlined_call_operand.vmem [shape: bf16[128,128], index: 1, kind: input, shape index: {}]   ;;  %s1112_s2 = inlined_call_operand.vmem [shape: f32[1,128], index: 2, kind: input, shape index: {}]   ;;  %s1113_s3 = inlined_call_operand.vmem [shape: f32[1,128], index: 3, kind: input, shape index: {}]   ;;  %s1114_s4 = inlined_call_operand.vmem [shape: bf16[128,128], index: 4, kind: input, shape index: {}]   ;;  %s1115_s5 = inlined_call_operand.vmem [shape: bf16[128,128], index: 5, kind: input, shape index: {}]   ;;  %s1116_s6 = inlined_call_operand.vmem [shape: f32[1,128], index: 6, kind: input, shape index: {}]   ;;  %s1117_s7 = inlined_call_operand.vmem [shape: f32[1,128], index: 7, kind: input, shape index: {}]   ;;  %s1118_s8 = inlined_call_operand.vmem [shape: f32[128,128], index: 8, kind: output, shape index: {}]  }
   0x1 LB: > { %s806_s28 = sadd.s32 4294967295, %s957_s27   ;;  %p810_p0 = scmp.ge.s32.totalorder %s957_s27, 1  ;;  %s957_s27 = sphi %s1004_s27, %s18_s27  }
   0x2   : > { %p274_p1 = scmp.lt.s32.totalorder %s957_s27, 3 }
   0x4   : > { %p275_p2 = pnand %p810_p0, %p274_p1 }
   0x5   : > { %v927_v0 = vld [vmem:[%s1111_s1] sm:$0xff] (!%p275_p2)   ;;  %s811_s9 = sshll.u32 (!%p275_p2), %s806_s28, 3  ;;  %v929_v2 = vld [vmem:[%s1111_s1 + $0x8] sm:$0xff] (!%p275_p2)   ;;  %v931_v4 = vld [vmem:[%s1111_s1 + $0x10] sm:$0xff] (!%p275_p2)  }
   0x6   : > { %278 = sbr.rel (%p275_p2) target bundleno = 271 (0x10f), region = 52  ;;  %v928_v1 = vld [vmem:[%s1115_s5] sm:$0xff] (!%p275_p2)   ;;  %871 = vmatprep.subr.bf16.mxu0 (!%p275_p2), %v927_v0  ;;  %p314_p3 = scmp.lt.s32.totalorder (!%p275_p2), %s811_s9, 15  ;;  %v930_v3 = vld [vmem:[%s1115_s5 + $0x8] sm:$0xff] (!%p275_p2)   ;;  %v932_v5 = vld [vmem:[%s1115_s5 + $0x10] sm:$0xff] (!%p275_p2)  }
   0x7   : > { %895 = vmatprep.subr.bf16.mxu1 (!%p275_p2), %v928_v1  ;;  %872 = vmatpush3.bf16.msra.mxu0 (!%p275_p2), %v927_v0  ;;  %v933_v6 = vld [vmem:[%s1111_s1 + $0x18] sm:$0xff] (!%p275_p2)   ;;  %v935_v8 = vld [vmem:[%s1111_s1 + $0x20] sm:$0xff] (!%p275_p2)   ;;  %v937_v10 = vld [vmem:[%s1111_s1 + $0x28] sm:$0xff] (!%p275_p2)  }
   0x8   : > { %896 = vmatpush3.bf16.msra.mxu1 (!%p275_p2), %v928_v1  ;;  %873 = vmatprep.subr.bf16.mxu0 (!%p275_p2), %v929_v2  ;;  %v934_v7 = vld [vmem:[%s1115_s5 + $0x18] sm:$0xff] (!%p275_p2)   ;;  %v936_v9 = vld [vmem:[%s1115_s5 + $0x20] sm:$0xff] (!%p275_p2)   ;;  %v938_v11 = vld [vmem:[%s1115_s5 + $0x28] sm:$0xff] (!%p275_p2)  }
   0x9   : > { %897 = vmatprep.subr.bf16.mxu1 (!%p275_p2), %v930_v3  ;;  %v939_v14 = vld [vmem:[%s1111_s1 + $0x30] sm:$0xff] (!%p275_p2)   ;;  %v941_v16 = vld [vmem:[%s1111_s1 + $0x38] sm:$0xff] (!%p275_p2)   ;;  %v829_v24 = vld [vmem:[%s1112_s2] ss:$0 sm:$0xff] (!%p275_p2) }
   0xa   : > { %v940_v15 = vld [vmem:[%s1115_s5 + $0x30] sm:$0xff] (!%p275_p2)   ;;  %v942_v17 = vld [vmem:[%s1115_s5 + $0x38] sm:$0xff] (!%p275_p2)   ;;  %v843_v25 = vld [vmem:[%s1116_s6] ss:$0 sm:$0xff] (!%p275_p2) }
   0xb   : > { %874 = vmatpush3.bf16.msra.mxu0 (!%p275_p2), %v929_v2  ;;  %v830_v27 = vld [vmem:[%s1113_s3] ss:$0 sm:$0xff] (!%p275_p2) }
   0xc   : > { %898 = vmatpush3.bf16.msra.mxu1 (!%p275_p2), %v930_v3  ;;  %875 = vmatprep.subr.bf16.mxu0 (!%p275_p2), %v931_v4  ;;  %v844_v30 = vld [vmem:[%s1117_s7] ss:$0 sm:$0xff] (!%p275_p2) }
   0xd   : > { %s1120_s9 = smov (!%p314_p3, %s811_s9), 15  ;;  %899 = vmatprep.subr.bf16.mxu1 %v932_v5 }
   0xe   : > { %s812_s24 = sshll.u32 %s1120_s9, 2  ;;  %s816_s15 = sshll.u32 %s1120_s9, 3 }
   0xf   : > { %876 = vmatpush3.bf16.msra.mxu0 %v931_v4  ;;  %s1048_s11 = scalar_lea.vmem %s1110_s0, %s812_s24  ;;  %s1056_s16 = scalar_lea.vmem %s1114_s4, %s812_s24 }
  0x10   : > { %900 = vmatpush3.bf16.msra.mxu1 %v932_v5  ;;  %877 = vmatprep.subr.bf16.mxu0 %v933_v6  ;;  %v943_v12 = vld [vmem:[%s1048_s11] sm:$0xff]   ;;  %v945_v18 = vld [vmem:[%s1048_s11 + $0x8] sm:$0xff]   ;;  %v947_v20 = vld [vmem:[%s1048_s11 + $0x10] sm:$0xff]   ;;  %s1097_s18 = scalar_lea.vmem %s1118_s8, %s816_s15 }
  0x11   : > { %901 = vmatprep.subr.bf16.mxu1 %v934_v7  ;;  %v944_v13 = vld [vmem:[%s1056_s16] sm:$0xff]   ;;  %887 = vmatprep.mubr.bf16.mxu0 %v943_v12  ;;  %v946_v19 = vld [vmem:[%s1056_s16 + $0x8] sm:$0xff]   ;;  %v948_v21 = vld [vmem:[%s1056_s16 + $0x10] sm:$0xff]  }
  0x12   : > { %911 = vmatprep.mubr.bf16.mxu1 %v944_v13  ;;  %v949_v22 = vld [vmem:[%s1048_s11 + $0x18] sm:$0xff]  }
  0x13   : > { %878 = vmatpush3.bf16.msra.mxu0 %v933_v6  ;;  %v950_v23 = vld [vmem:[%s1056_s16 + $0x18] sm:$0xff]  }
  0x14   : > { %902 = vmatpush3.bf16.msra.mxu1 %v934_v7  ;;  %879 = vmatprep.subr.bf16.mxu0 %v935_v8 }
  0x15   : > { %903 = vmatprep.subr.bf16.mxu1 %v936_v9 }
  0x17   : > { %880 = vmatpush3.bf16.msra.mxu0 %v935_v8 }
  0x18   : > { %904 = vmatpush3.bf16.msra.mxu1 %v936_v9  ;;  %881 = vmatprep.subr.bf16.mxu0 %v937_v10 }
  0x19   : > { %905 = vmatprep.subr.bf16.mxu1 %v938_v11 }
  0x1b   : > { %882 = vmatpush3.bf16.msra.mxu0 %v937_v10 }
  0x1c   : > { %906 = vmatpush3.bf16.msra.mxu1 %v938_v11  ;;  %883 = vmatprep.subr.bf16.mxu0 %v939_v14 }
  0x1d   : > { %907 = vmatprep.subr.bf16.mxu1 %v940_v15 }
  0x1f   : > { %884 = vmatpush3.bf16.msra.mxu0 %v939_v14 }
  0x20   : > { %908 = vmatpush3.bf16.msra.mxu1 %v940_v15  ;;  %885 = vmatprep.subr.bf16.mxu0 %v941_v16 }
  0x21   : > { %909 = vmatprep.subr.bf16.mxu1 %v942_v17 }
  0x23   : > { %886 = vmatpush3.bf16.msra.mxu0 %v941_v16 }
  0x24   : > { %910 = vmatpush3.bf16.msra.mxu1 %v942_v17 }
  0x26   : > { %888 = vmatmul.mubr.bf16.vlgmr.msra.gmra.mrb[0].mxu0 %v945_v18 }
  0x27   : > { %912 = vmatmul.mubr.bf16.vlgmr.msra.gmra.mrb[0].mxu1 %v946_v19  ;;  %891 = vmatprep.mubr.bf16.mxu0 %v947_v20 }
  0x28   : > { %915 = vmatprep.mubr.bf16.mxu1 %v948_v21 }
  0x2e   : > { %892 = vmatmul.mubr.bf16.gmra.mrb[4].mxu0 %v949_v22 }
  0x2f   : > { %916 = vmatmul.mubr.bf16.gmra.mrb[4].mxu1 %v950_v23 }
  0xf9   : > { %v889_v26 = vpop.f32.mrb[0].mxu0 }
  0xfa   : > { %v502_v28 = vmul.f32 %v889_v26, %v829_v24  ;;  %v913_v29 = vpop.f32.mrb[0].mxu1  ;;  %v462_v31 = vpop.f32.mrb[1].mxu0 }
  0xfb   : > { %v693_v32 = vmul.f32 %v913_v29, %v843_v25  ;;  %v500_v33 = vmul.f32 %v829_v24, %v462_v31  ;;  %v653_v34 = vpop.f32.mrb[1].mxu1  ;;  %v890_v35 = vpop.f32.mrb[2].mxu0 }
  0xfc   : > { %v517_v36 = vadd.f32 %v830_v27, %v502_v28  ;;  %v691_v37 = vmul.f32 %v843_v25, %v653_v34  ;;  %v503_v38 = vmul.f32 %v890_v35, %v829_v24  ;;  %v914_v39 = vpop.f32.mrb[2].mxu1  ;;  %v465_v40 = vpop.f32.mrb[3].mxu0 }
  0xfd   : > { %v708_v41 = vadd.f32 %v844_v30, %v693_v32  ;;  %v515_v42 = vadd.f32 %v830_v27, %v500_v33  ;;  %v694_v43 = vmul.f32 %v914_v39, %v843_v25  ;;  %v501_v44 = vmul.f32 %v829_v24, %v465_v40  ;;  %v656_v45 = vpop.f32.mrb[3].mxu1 }
  0xfe   : > { %v706_v46 = vadd.f32 %v844_v30, %v691_v37  ;;  %v518_v47 = vadd.f32 %v830_v27, %v503_v38  ;;  %v692_v48 = vmul.f32 %v843_v25, %v656_v45 }
  0xff   : > { %v716_v49 = vadd.f32 %v708_v41, %v517_v36  ;;  %v709_v50 = vadd.f32 %v844_v30, %v694_v43  ;;  %v516_v51 = vadd.f32 %v830_v27, %v501_v44 }
 0x100   : > { %v714_v52 = vadd.f32 %v706_v46, %v515_v42  ;;  %v707_v53 = vadd.f32 %v844_v30, %v692_v48 }
 0x101   : > { %v724_v54 = vmax.f32 %v716_v49, 0.0  ;;  %v717_v55 = vadd.f32 %v709_v50, %v518_v47  ;;  %v893_v56 = vpop.f32.mrb[4].mxu0 }
 0x102   : > { %v722_v57 = vmax.f32 %v714_v52, 0.0  ;;  %v715_v58 = vadd.f32 %v707_v53, %v516_v51  ;;  %v506_v59 = vmul.f32 %v893_v56, %v829_v24  ;;  %v917_v60 = vpop.f32.mrb[4].mxu1  ;;  %v478_v61 = vpop.f32.mrb[5].mxu0 }
 0x103   : > { %732 = vst [vmem:[%s1097_s18 + $0x10] sm:$0xff] %v724_v54  ;;  %v725_v62 = vmax.f32 %v717_v55, 0.0  ;;  %v697_v63 = vmul.f32 %v917_v60, %v843_v25  ;;  %v504_v0 = vmul.f32 %v829_v24, %v478_v61  ;;  %v669_v1 = vpop.f32.mrb[5].mxu1  ;;  %v894_v2 = vpop.f32.mrb[6].mxu0 }
 0x104   : > { %730 = vst [vmem:[%s1097_s18] sm:$0xff] %v722_v57  ;;  %v723_v3 = vmax.f32 %v715_v58, 0.0  ;;  %v521_v4 = vadd.f32 %v830_v27, %v506_v59  ;;  %v695_v5 = vmul.f32 %v843_v25, %v669_v1  ;;  %v507_v6 = vmul.f32 %v894_v2, %v829_v24  ;;  %v918_v7 = vpop.f32.mrb[6].mxu1  ;;  %v481_v8 = vpop.f32.mrb[7].mxu0 }
 0x105   : > { %733 = vst [vmem:[%s1097_s18 + $0x18] sm:$0xff] %v725_v62  ;;  %v712_v9 = vadd.f32 %v844_v30, %v697_v63  ;;  %v519_v10 = vadd.f32 %v830_v27, %v504_v0  ;;  %v698_v11 = vmul.f32 %v918_v7, %v843_v25  ;;  %v505_v12 = vmul.f32 %v829_v24, %v481_v8  ;;  %v672_v13 = vpop.f32.mrb[7].mxu1 }
 0x106   : > { %731 = vst [vmem:[%s1097_s18 + $0x8] sm:$0xff] %v723_v3  ;;  %v710_v14 = vadd.f32 %v844_v30, %v695_v5  ;;  %v522_v15 = vadd.f32 %v830_v27, %v507_v6  ;;  %v696_v16 = vmul.f32 %v843_v25, %v672_v13 }
 0x107   : > { %v720_v17 = vadd.f32 %v712_v9, %v521_v4  ;;  %v713_v18 = vadd.f32 %v844_v30, %v698_v11  ;;  %v520_v19 = vadd.f32 %v830_v27, %v505_v12 }
 0x108   : > { %v718_v20 = vadd.f32 %v710_v14, %v519_v10  ;;  %v711_v21 = vadd.f32 %v844_v30, %v696_v16 }
 0x109   : > { %v728_v22 = vmax.f32 %v720_v17, 0.0  ;;  %v721_v23 = vadd.f32 %v713_v18, %v522_v15 }
 0x10a   : > { %v726_v26 = vmax.f32 %v718_v20, 0.0  ;;  %v719_v28 = vadd.f32 %v711_v21, %v520_v19 }
 0x10b   : > { %736 = vst [vmem:[%s1097_s18 + $0x30] sm:$0xff] %v728_v22  ;;  %v729_v29 = vmax.f32 %v721_v23, 0.0 }
 0x10c   : > { %734 = vst [vmem:[%s1097_s18 + $0x20] sm:$0xff] %v726_v26  ;;  %v727_v24 = vmax.f32 %v719_v28, 0.0 }
 0x10d   : > { %737 = vst [vmem:[%s1097_s18 + $0x38] sm:$0xff] %v729_v29 }
 0x10e   : > { %735 = vst [vmem:[%s1097_s18 + $0x28] sm:$0xff] %v727_v24 }
 0x10f PF: > { %s18_s27 = sadd.s32 1, %s957_s27  }
 0x110   : > { %p15_p4 = scmp.ge.s32.totalorder %s18_s27, 4  }
 0x112   :  { %17 = sbr.rel (!%p15_p4) target bundleno = 1 (0x1), region = 85 }

</bundles_post_ra>
